<compile_context>
chip_gen: v7x
topology: tpu7x:2x2x1
jax: 0.10.0
libtpu: 0.0.40
codegen_flags: <defaults>
</compile_context>

<pallas_src>
import functools
import math

import jax
import jax.numpy as jnp
from jax.experimental import pallas as pl
from jax.experimental.pallas import tpu as pltpu

_NEG_INF = -1e30                 # finite "-inf": keeps exp() NaN-free on masked tiles
_LANE = 128                      # TPU lane width; sequence is padded to this
_VMEM_LIMIT = 48 * 1024 * 1024   # fits v7x's 64 MiB physical VMEM, raises v5e/v6e defaults


def _round_up(n: int, m: int) -> int:
    return ((n + m - 1) // m) * m


def _pick_tile(n: int, preferred) -> int:
    """Largest preferred tile that divides n (falls back to the full extent)."""
    for t in preferred:
        if n % t == 0:
            return t
    return n


def _invariant_spec(block_shape, index_map, single_buffer: bool):
    """BlockSpec for a grid-invariant operand (weights / biases).

    With single_buffer=True the operand is held in one VMEM buffer
    (pl.Buffered(1)) — its block index never changes, so double buffering
    would only double its VMEM footprint.
    """
    if single_buffer:
        return pl.BlockSpec(block_shape, index_map, pipeline_mode=pl.Buffered(1))
    return pl.BlockSpec(block_shape, index_map)


# ---------------------------------------------------------------------------
# Kernel 1: QKV projection  (x @ Wq + bq, x @ Wk + bk, x @ Wv + bv)
#           (scale 1/sqrt(dim_head) already folded into Wq / bq by the wrapper)
# ---------------------------------------------------------------------------
def _qkv_proj_kernel(x_ref, wq_ref, wk_ref, wv_ref, bq_ref, bk_ref, bv_ref,
                     q_ref, k_ref, v_ref):
    # Matmuls run in the weight dtype (bf16 by default for full MXU rate);
    # accumulation is f32 via preferred_element_type.
    x = x_ref[0].astype(wq_ref.dtype)                              # (Ts, D)

    def proj(w_ref, b_ref, o_ref):
        y = jnp.dot(x, w_ref[...], preferred_element_type=jnp.float32)
        o_ref[0] = (y + b_ref[0].astype(jnp.float32)).astype(o_ref.dtype)

    proj(wq_ref, bq_ref, q_ref)
    proj(wk_ref, bk_ref, k_ref)
    proj(wv_ref, bv_ref, v_ref)


def _qkv_proj(x, wq, wk, wv, bq, bk, bv, *, seq_tile, out_dtype, single_buffer):
    B, S, D = x.shape
    assert S % seq_tile == 0
    x_spec = pl.BlockSpec((1, seq_tile, D), lambda b, s: (b, s, 0))
    w_spec = _invariant_spec((D, D), lambda b, s: (0, 0), single_buffer)
    b_spec = _invariant_spec((1, D), lambda b, s: (0, 0), single_buffer)
    out_sds = jax.ShapeDtypeStruct((B, S, D), out_dtype)
    out_spec = pl.BlockSpec((1, seq_tile, D), lambda b, s: (b, s, 0))
    return pl.pallas_call(
        _qkv_proj_kernel,
        out_shape=(out_sds, out_sds, out_sds),
        grid=(B, S // seq_tile),
        in_specs=[x_spec, w_spec, w_spec, w_spec, b_spec, b_spec, b_spec],
        out_specs=(out_spec, out_spec, out_spec),
        compiler_params=pltpu.CompilerParams(
            dimension_semantics=("parallel", "parallel"),
            vmem_limit_bytes=_VMEM_LIMIT),
    )(x, wq, wk, wv, bq, bk, bv)


# ---------------------------------------------------------------------------
# Kernel 2: flash attention (online softmax over kv tiles) + fused out_proj
# ---------------------------------------------------------------------------
def _flash_kernel(q_ref, k_ref, v_ref, wo_ref, bo_ref, o_ref,
                  qh_ref, m_ref, l_ref, acc_ref,
                  *, num_heads, dim_head, q_tile, kv_tile, s_valid, s_padded):
    ki = pl.program_id(2)

    def split_heads(x2d, t):                                       # (T, D) -> (H, T, dh)
        return x2d.reshape(t, num_heads, dim_head).transpose(1, 0, 2)

    @pl.when(ki == 0)
    def _():
        # Hoist the q head-split (XLU relayout) out of the kv loop: the q block
        # is identical for every kv step of this q tile.  The softmax scale is
        # already folded into wq/bq, so no per-step scale multiply either.
        qh_ref[...] = split_heads(q_ref[0], q_tile)
        m_ref[...] = jnp.full(m_ref.shape, _NEG_INF, dtype=m_ref.dtype)
        l_ref[...] = jnp.zeros(l_ref.shape, dtype=l_ref.dtype)
        acc_ref[...] = jnp.zeros(acc_ref.shape, dtype=acc_ref.dtype)

    kh = split_heads(k_ref[0], kv_tile)                            # (H, Tk, dh)
    vh = split_heads(v_ref[0], kv_tile)                            # (H, Tk, dh)
    qh = qh_ref[...]                                               # (H, Tq, dh)

    # Head-batched QK^T with f32 accumulation (contraction over dh on the MXU).
    s = jnp.einsum('hqd,hkd->hqk', qh, kh,
                   preferred_element_type=jnp.float32)             # (H, Tq, Tk) f32

    if s_padded != s_valid:   # static: only emitted when the sequence was padded
        col = ki * kv_tile + jax.lax.broadcasted_iota(jnp.int32, s.shape, 2)
        s = jnp.where(col < s_valid, s, _NEG_INF)

    # Online softmax update with lane-dense (H, Tq) running max / sum.
    m_prev = m_ref[...]                                            # (H, Tq)
    m_next = jnp.maximum(m_prev, jnp.max(s, axis=-1))              # (H, Tq)
    alpha = jnp.exp(m_prev - m_next)                               # (H, Tq)
    p = jnp.exp(s - m_next[..., None])                             # (H, Tq, Tk) f32
    l_ref[...] = alpha * l_ref[...] + jnp.sum(p, axis=-1)
    acc_ref[...] = alpha[..., None] * acc_ref[...] + jnp.einsum(
        'hqk,hkd->hqd', p.astype(vh.dtype), vh,
        preferred_element_type=jnp.float32)                        # (H, Tq, dh) f32
    m_ref[...] = m_next

    @pl.when(ki == pl.num_programs(2) - 1)
    def _():
        # Finalize once per q tile: exact reciprocal (essentially free here),
        # merge heads to a lane-dense (Tq, D) tile, fused out_proj GEMM + bias.
        inv_l = pl.reciprocal(l_ref[...], approx=False)[..., None]
        attn = acc_ref[...] * inv_l                                # (H, Tq, dh) f32
        attn = attn.transpose(1, 0, 2).reshape(q_tile, num_heads * dim_head)
        out = jnp.dot(attn.astype(wo_ref.dtype), wo_ref[...],
                      preferred_element_type=jnp.float32)
        o_ref[0] = (out + bo_ref[0].astype(jnp.float32)).astype(o_ref.dtype)


def _flash_out_proj(q, k, v, w_out, b_out, out_dtype, *, num_heads, dim_head,
                    q_tile, kv_tile, s_valid, single_buffer):
    B, S, D = q.shape
    assert S % q_tile == 0 and S % kv_tile == 0
    kernel = functools.partial(
        _flash_kernel, num_heads=num_heads, dim_head=dim_head,
        q_tile=q_tile, kv_tile=kv_tile, s_valid=s_valid, s_padded=S)
    return pl.pallas_call(
        kernel,
        out_shape=jax.ShapeDtypeStruct((B, S, D), out_dtype),
        grid=(B, S // q_tile, S // kv_tile),
        in_specs=[
            pl.BlockSpec((1, q_tile, D), lambda b, qi, ki: (b, qi, 0)),   # q tile
            pl.BlockSpec((1, kv_tile, D), lambda b, qi, ki: (b, ki, 0)),  # k tile
            pl.BlockSpec((1, kv_tile, D), lambda b, qi, ki: (b, ki, 0)),  # v tile
            _invariant_spec((D, D), lambda b, qi, ki: (0, 0), single_buffer),  # w_out
            _invariant_spec((1, D), lambda b, qi, ki: (0, 0), single_buffer),  # b_out
        ],
        out_specs=pl.BlockSpec((1, q_tile, D), lambda b, qi, ki: (b, qi, 0)),
        scratch_shapes=[
            pltpu.VMEM((num_heads, q_tile, dim_head), q.dtype),        # hoisted q heads
            pltpu.VMEM((num_heads, q_tile), jnp.float32),              # running max (lane-dense)
            pltpu.VMEM((num_heads, q_tile), jnp.float32),              # running sum (lane-dense)
            pltpu.VMEM((num_heads, q_tile, dim_head), jnp.float32),    # running acc
        ],
        compiler_params=pltpu.CompilerParams(
            dimension_semantics=("parallel", "parallel", "arbitrary"),
            vmem_limit_bytes=_VMEM_LIMIT),
    )(q, k, v, w_out, b_out)


# ---------------------------------------------------------------------------
# Public wrapper
# ---------------------------------------------------------------------------
def self_attention(x, w_in, b_in, w_out, b_out, *, num_heads: int,
                   q_tile=None, kv_tile=None, interm_dtype=jnp.bfloat16):
    """SelfAttention forward (causal_mask=False path).

    x: (B, S, D); w_in: (D, 3D); b_in: (1, 3D); w_out: (D, D); b_out: (1, D)
    (nn.Linear params pre-transposed to y = x @ W + b layout).

    interm_dtype is the matmul/intermediate dtype (bf16 by default — the MXU is
    bf16-native on v5e/v6e/v7x); accumulation is always f32 and the output
    keeps x.dtype.
    """
    B, S, D = x.shape
    assert D % num_heads == 0
    dim_head = D // num_heads
    scale = 1.0 / math.sqrt(dim_head)

    # Split the fused in_proj weight/bias in the wrapper (cheap one-time XLA
    # slices) and FOLD the softmax scale into wq/bq so the flash kernel never
    # multiplies the (H, Tq, Tk) score matrix by it.
    wq, wk, wv = w_in[:, :D], w_in[:, D:2 * D], w_in[:, 2 * D:]
    bq, bk, bv = b_in[:, :D], b_in[:, D:2 * D], b_in[:, 2 * D:]
    wq = (wq * scale).astype(interm_dtype)
    wk = wk.astype(interm_dtype)
    wv = wv.astype(interm_dtype)
    bq = (bq * scale).astype(jnp.float32)
    bk = bk.astype(jnp.float32)
    bv = bv.astype(jnp.float32)
    wo = w_out.astype(interm_dtype)
    bo = b_out.astype(jnp.float32)

    # Pad the sequence to a multiple of 128 lanes (tile floor per perf review);
    # padded kv columns are masked in-kernel, padded q rows sliced off below.
    S_pad = _round_up(S, _LANE)
    x_p = x if S_pad == S else jnp.pad(x, ((0, 0), (0, S_pad - S), (0, 0)))

    seq_tile = _pick_tile(S_pad, (512, 256, 128))
    # q_tile large-ish (amortizes K/V re-reads), kv_tile capped at 128 so the
    # live f32 score temporaries stay small (fits v7x 64 MiB / v5e defaults).
    tq = q_tile if q_tile is not None else _pick_tile(S_pad, (256, 128))
    tk = kv_tile if kv_tile is not None else 128
    assert S_pad % tq == 0 and S_pad % tk == 0, "q_tile/kv_tile must divide padded seq"

    def run(single_buffer):
        q, k, v = _qkv_proj(x_p, wq, wk, wv, bq, bk, bv,
                            seq_tile=seq_tile, out_dtype=interm_dtype,
                            single_buffer=single_buffer)
        return _flash_out_proj(q, k, v, wo, bo, x.dtype,
                               num_heads=num_heads, dim_head=dim_head,
                               q_tile=tq, kv_tile=tk, s_valid=S,
                               single_buffer=single_buffer)

    try:
        out = run(single_buffer=True)    # single-buffer grid-invariant weights
    except Exception:                    # pl.Buffered(1) unsupported -> default double-buffering
        out = run(single_buffer=False)

    return out if S_pad == S else out[:, :S, :]


# ---------------------------------------------------------------------------
# Pure-JAX reference (mirrors the PyTorch forward, causal_mask=False)
# ---------------------------------------------------------------------------
def _reference(x, w_in, b_in, w_out, b_out, num_heads):
    B, S, D = x.shape
    dh = D // num_heads
    qkv = x @ w_in + b_in[0]
    q, k, v = jnp.split(qkv, 3, axis=-1)
    q = q.reshape(B, S, num_heads, dh).transpose(0, 2, 1, 3)
    k = k.reshape(B, S, num_heads, dh).transpose(0, 2, 1, 3)
    v = v.reshape(B, S, num_heads, dh).transpose(0, 2, 1, 3)
    w = (q @ jnp.swapaxes(k, -2, -1)) / math.sqrt(dh)
    w = jax.nn.softmax(w, axis=-1)
    out = (w @ v).transpose(0, 2, 1, 3).reshape(B, S, D)
    return out @ w_out + b_out[0]


if __name__ == "__main__":
    # Small shapes consistent with the module: batch=2, seq=8, d_embed=32, heads=4.
    B, S, D, H = 2, 8, 32, 4

    key = jax.random.PRNGKey(0)
    kx, kw1, kb1, kw2, kb2, kx2 = jax.random.split(key, 6)

    x = jax.random.normal(kx, (B, S, D), dtype=jnp.float32)
    # Pre-transposed nn.Linear params: (in_features, out_features).
    w_in = jax.random.normal(kw1, (D, 3 * D), dtype=jnp.float32) * (1.0 / math.sqrt(D))
    b_in = jax.random.normal(kb1, (1, 3 * D), dtype=jnp.float32) * 0.02
    w_out = jax.random.normal(kw2, (D, D), dtype=jnp.float32) * (1.0 / math.sqrt(D))
    b_out = jax.random.normal(kb2, (1, D), dtype=jnp.float32) * 0.02

    ref = _reference(x, w_in, b_in, w_out, b_out, H)

    # Test 1: f32 intermediates (exact path; S=8 pads to one 128-wide tile).
    out = self_attention(x, w_in, b_in, w_out, b_out, num_heads=H,
                         interm_dtype=jnp.float32)
    out = jax.block_until_ready(out)
    assert out.shape == (B, S, D)
    assert jnp.allclose(out, ref, atol=2e-3, rtol=2e-3), "mismatch vs reference (f32 path)"

    # Test 2: default bf16 intermediates (full-rate MXU path), looser tolerance.
    out_bf = self_attention(x, w_in, b_in, w_out, b_out, num_heads=H)
    out_bf = jax.block_until_ready(out_bf)
    assert out_bf.shape == (B, S, D)
    assert jnp.allclose(out_bf, ref, atol=6e-2, rtol=6e-2), "mismatch vs reference (bf16 path)"

    # Test 3: multi-tile online softmax + padded-kv masking (S=192 pads to 256:
    # two q tiles x two kv tiles, last kv tile is half padding).
    S2 = 192
    x2 = jax.random.normal(kx2, (B, S2, D), dtype=jnp.float32)
    out2 = self_attention(x2, w_in, b_in, w_out, b_out, num_heads=H,
                          q_tile=128, kv_tile=128, interm_dtype=jnp.float32)
    out2 = jax.block_until_ready(out2)
    ref2 = _reference(x2, w_in, b_in, w_out, b_out, H)
    assert out2.shape == (B, S2, D)
    assert jnp.allclose(out2, ref2, atol=2e-3, rtol=2e-3), "mismatch vs reference (tiled/masked)"

    print("KERNEL_OK")
</pallas_src>

<mosaic_0001>
module attributes {stable_mosaic.version = 11 : i64} {
  func.func @_qkv_proj_kernel(%arg0: i32, %arg1: i32, %arg2: memref<1x128x32xf32, #tpu.memory_space<vmem>>, %arg3: memref<32x32xf32, #tpu.memory_space<vmem>>, %arg4: memref<32x32xf32, #tpu.memory_space<vmem>>, %arg5: memref<32x32xf32, #tpu.memory_space<vmem>>, %arg6: memref<1x32xf32, #tpu.memory_space<vmem>>, %arg7: memref<1x32xf32, #tpu.memory_space<vmem>>, %arg8: memref<1x32xf32, #tpu.memory_space<vmem>>, %arg9: memref<1x128x32xf32, #tpu.memory_space<vmem>>, %arg10: memref<1x128x32xf32, #tpu.memory_space<vmem>>, %arg11: memref<1x128x32xf32, #tpu.memory_space<vmem>>) attributes {dimension_semantics = [#tpu.dimension_semantics<parallel>, #tpu.dimension_semantics<parallel>], iteration_bounds = array<i64: 2, 1>, scalar_prefetch = 0 : i64, scratch_operands = 0 : i64, tpu.core_type = #tpu.core_type<tc>, window_params = [{transform_indices = @transform_0, window_bounds = array<i64: 1, 128, 32>}, {pipeline_mode = #tpu.pipeline_mode<synchronous>, transform_indices = @transform_1, window_bounds = array<i64: 32, 32>}, {pipeline_mode = #tpu.pipeline_mode<synchronous>, transform_indices = @transform_2, window_bounds = array<i64: 32, 32>}, {pipeline_mode = #tpu.pipeline_mode<synchronous>, transform_indices = @transform_3, window_bounds = array<i64: 32, 32>}, {pipeline_mode = #tpu.pipeline_mode<synchronous>, transform_indices = @transform_4, window_bounds = array<i64: 1, 32>}, {pipeline_mode = #tpu.pipeline_mode<synchronous>, transform_indices = @transform_5, window_bounds = array<i64: 1, 32>}, {pipeline_mode = #tpu.pipeline_mode<synchronous>, transform_indices = @transform_6, window_bounds = array<i64: 1, 32>}, {transform_indices = @transform_7, window_bounds = array<i64: 1, 128, 32>}, {transform_indices = @transform_8, window_bounds = array<i64: 1, 128, 32>}, {transform_indices = @transform_9, window_bounds = array<i64: 1, 128, 32>}]} {
    %c0 = arith.constant 0 : index
    %c0_0 = arith.constant 0 : index
    %c0_1 = arith.constant 0 : index
    %0 = vector.load %arg2[%c0, %c0_0, %c0_1] : memref<1x128x32xf32, #tpu.memory_space<vmem>>, vector<1x128x32xf32>
    %1 = vector.shape_cast %0 : vector<1x128x32xf32> to vector<128x32xf32>
    %c0_2 = arith.constant 0 : index
    %c0_3 = arith.constant 0 : index
    %2 = vector.load %arg3[%c0_2, %c0_3] : memref<32x32xf32, #tpu.memory_space<vmem>>, vector<32x32xf32>
    %cst = arith.constant dense<0.000000e+00> : vector<128x32xf32>
    %3 = tpu.matmul %1, %2, %cst {dimension_numbers = #tpu.dot_dimension_numbers<[1], [0], [0], [1], [0, 0, 1, 1], [], []>} : vector<128x32xf32>, vector<32x32xf32>, vector<128x32xf32> -> vector<128x32xf32>
    %c0_4 = arith.constant 0 : index
    %c0_5 = arith.constant 0 : index
    %4 = vector.load %arg6[%c0_4, %c0_5] : memref<1x32xf32, #tpu.memory_space<vmem>>, vector<1x32xf32>
    %5 = vector.shape_cast %4 : vector<1x32xf32> to vector<32xf32>
    %6 = vector.shape_cast %5 : vector<32xf32> to vector<1x32xf32>
    %7 = vector.broadcast %6 : vector<1x32xf32> to vector<128x32xf32>
    %8 = arith.addf %3, %7 : vector<128x32xf32>
    %c0_6 = arith.constant 0 : index
    %c0_7 = arith.constant 0 : index
    %c0_8 = arith.constant 0 : index
    %9 = vector.load %arg9[%c0_6, %c0_7, %c0_8] : memref<1x128x32xf32, #tpu.memory_space<vmem>>, vector<1x128x32xf32>
    %10 = vector.shape_cast %9 : vector<1x128x32xf32> to vector<128x32xf32>
    %11 = vector.shape_cast %8 : vector<128x32xf32> to vector<1x128x32xf32>
    tpu.vector_store %arg9[%c0_6, %c0_7, %c0_8], %11 {strides = array<i32>} : memref<1x128x32xf32, #tpu.memory_space<vmem>>, vector<1x128x32xf32>,
    %c0_9 = arith.constant 0 : index
    %c0_10 = arith.constant 0 : index
    %12 = vector.load %arg4[%c0_9, %c0_10] : memref<32x32xf32, #tpu.memory_space<vmem>>, vector<32x32xf32>
    %cst_11 = arith.constant dense<0.000000e+00> : vector<128x32xf32>
    %13 = tpu.matmul %1, %12, %cst_11 {dimension_numbers = #tpu.dot_dimension_numbers<[1], [0], [0], [1], [0, 0, 1, 1], [], []>} : vector<128x32xf32>, vector<32x32xf32>, vector<128x32xf32> -> vector<128x32xf32>
    %c0_12 = arith.constant 0 : index
    %c0_13 = arith.constant 0 : index
    %14 = vector.load %arg7[%c0_12, %c0_13] : memref<1x32xf32, #tpu.memory_space<vmem>>, vector<1x32xf32>
    %15 = vector.shape_cast %14 : vector<1x32xf32> to vector<32xf32>
    %16 = vector.shape_cast %15 : vector<32xf32> to vector<1x32xf32>
    %17 = vector.broadcast %16 : vector<1x32xf32> to vector<128x32xf32>
    %18 = arith.addf %13, %17 : vector<128x32xf32>
    %c0_14 = arith.constant 0 : index
    %c0_15 = arith.constant 0 : index
    %c0_16 = arith.constant 0 : index
    %19 = vector.load %arg10[%c0_14, %c0_15, %c0_16] : memref<1x128x32xf32, #tpu.memory_space<vmem>>, vector<1x128x32xf32>
    %20 = vector.shape_cast %19 : vector<1x128x32xf32> to vector<128x32xf32>
    %21 = vector.shape_cast %18 : vector<128x32xf32> to vector<1x128x32xf32>
    tpu.vector_store %arg10[%c0_14, %c0_15, %c0_16], %21 {strides = array<i32>} : memref<1x128x32xf32, #tpu.memory_space<vmem>>, vector<1x128x32xf32>,
    %c0_17 = arith.constant 0 : index
    %c0_18 = arith.constant 0 : index
    %22 = vector.load %arg5[%c0_17, %c0_18] : memref<32x32xf32, #tpu.memory_space<vmem>>, vector<32x32xf32>
    %cst_19 = arith.constant dense<0.000000e+00> : vector<128x32xf32>
    %23 = tpu.matmul %1, %22, %cst_19 {dimension_numbers = #tpu.dot_dimension_numbers<[1], [0], [0], [1], [0, 0, 1, 1], [], []>} : vector<128x32xf32>, vector<32x32xf32>, vector<128x32xf32> -> vector<128x32xf32>
    %c0_20 = arith.constant 0 : index
    %c0_21 = arith.constant 0 : index
    %24 = vector.load %arg8[%c0_20, %c0_21] : memref<1x32xf32, #tpu.memory_space<vmem>>, vector<1x32xf32>
    %25 = vector.shape_cast %24 : vector<1x32xf32> to vector<32xf32>
    %26 = vector.shape_cast %25 : vector<32xf32> to vector<1x32xf32>
    %27 = vector.broadcast %26 : vector<1x32xf32> to vector<128x32xf32>
    %28 = arith.addf %23, %27 : vector<128x32xf32>
    %c0_22 = arith.constant 0 : index
    %c0_23 = arith.constant 0 : index
    %c0_24 = arith.constant 0 : index
    %29 = vector.load %arg11[%c0_22, %c0_23, %c0_24] : memref<1x128x32xf32, #tpu.memory_space<vmem>>, vector<1x128x32xf32>
    %30 = vector.shape_cast %29 : vector<1x128x32xf32> to vector<128x32xf32>
    %31 = vector.shape_cast %28 : vector<128x32xf32> to vector<1x128x32xf32>
    tpu.vector_store %arg11[%c0_22, %c0_23, %c0_24], %31 {strides = array<i32>} : memref<1x128x32xf32, #tpu.memory_space<vmem>>, vector<1x128x32xf32>,
    return
  }
  func.func @transform_0(%arg0: i32, %arg1: i32) -> (i32, i32, i32) {
    %c0_i32 = arith.constant 0 : i32
    %c0_i32_0 = arith.constant 0 : i32
    return %arg0, %arg1, %c0_i32 : i32, i32, i32
  }
  func.func @transform_1(%arg0: i32, %arg1: i32) -> (i32, i32) {
    %c0_i32 = arith.constant 0 : i32
    %c0_i32_0 = arith.constant 0 : i32
    %c0_i32_1 = arith.constant 0 : i32
    return %c0_i32, %c0_i32_0 : i32, i32
  }
  func.func @transform_2(%arg0: i32, %arg1: i32) -> (i32, i32) {
    %c0_i32 = arith.constant 0 : i32
    %c0_i32_0 = arith.constant 0 : i32
    %c0_i32_1 = arith.constant 0 : i32
    return %c0_i32, %c0_i32_0 : i32, i32
  }
  func.func @transform_3(%arg0: i32, %arg1: i32) -> (i32, i32) {
    %c0_i32 = arith.constant 0 : i32
    %c0_i32_0 = arith.constant 0 : i32
    %c0_i32_1 = arith.constant 0 : i32
    return %c0_i32, %c0_i32_0 : i32, i32
  }
  func.func @transform_4(%arg0: i32, %arg1: i32) -> (i32, i32) {
    %c0_i32 = arith.constant 0 : i32
    %c0_i32_0 = arith.constant 0 : i32
    %c0_i32_1 = arith.constant 0 : i32
    return %c0_i32, %c0_i32_0 : i32, i32
  }
  func.func @transform_5(%arg0: i32, %arg1: i32) -> (i32, i32) {
    %c0_i32 = arith.constant 0 : i32
    %c0_i32_0 = arith.constant 0 : i32
    %c0_i32_1 = arith.constant 0 : i32
    return %c0_i32, %c0_i32_0 : i32, i32
  }
  func.func @transform_6(%arg0: i32, %arg1: i32) -> (i32, i32) {
    %c0_i32 = arith.constant 0 : i32
    %c0_i32_0 = arith.constant 0 : i32
    %c0_i32_1 = arith.constant 0 : i32
    return %c0_i32, %c0_i32_0 : i32, i32
  }
  func.func @transform_7(%arg0: i32, %arg1: i32) -> (i32, i32, i32) {
    %c0_i32 = arith.constant 0 : i32
    %c0_i32_0 = arith.constant 0 : i32
    return %arg0, %arg1, %c0_i32 : i32, i32, i32
  }
  func.func @transform_8(%arg0: i32, %arg1: i32) -> (i32, i32, i32) {
    %c0_i32 = arith.constant 0 : i32
    %c0_i32_0 = arith.constant 0 : i32
    return %arg0, %arg1, %c0_i32 : i32, i32, i32
  }
  func.func @transform_9(%arg0: i32, %arg1: i32) -> (i32, i32, i32) {
    %c0_i32 = arith.constant 0 : i32
    %c0_i32_0 = arith.constant 0 : i32
    return %arg0, %arg1, %c0_i32 : i32, i32, i32
  }
}

module attributes {stable_mosaic.version = 11 : i64} {
  func.func @_qkv_proj_kernel(%arg0: i32, %arg1: i32, %arg2: memref<1x128x32xf32, #tpu.memory_space<vmem>>, %arg3: memref<32x32xf32, #tpu.memory_space<vmem>>, %arg4: memref<32x32xf32, #tpu.memory_space<vmem>>, %arg5: memref<32x32xf32, #tpu.memory_space<vmem>>, %arg6: memref<1x32xf32, #tpu.memory_space<vmem>>, %arg7: memref<1x32xf32, #tpu.memory_space<vmem>>, %arg8: memref<1x32xf32, #tpu.memory_space<vmem>>, %arg9: memref<1x128x32xf32, #tpu.memory_space<vmem>>, %arg10: memref<1x128x32xf32, #tpu.memory_space<vmem>>, %arg11: memref<1x128x32xf32, #tpu.memory_space<vmem>>) attributes {dimension_semantics = [#tpu.dimension_semantics<parallel>, #tpu.dimension_semantics<parallel>], iteration_bounds = array<i64: 2, 1>, scalar_prefetch = 0 : i64, scratch_operands = 0 : i64, tpu.core_type = #tpu.core_type<tc>, window_params = [{transform_indices = @transform_0, window_bounds = array<i64: 1, 128, 32>}, {pipeline_mode = #tpu.pipeline_mode<synchronous>, transform_indices = @transform_1, window_bounds = array<i64: 32, 32>}, {pipeline_mode = #tpu.pipeline_mode<synchronous>, transform_indices = @transform_2, window_bounds = array<i64: 32, 32>}, {pipeline_mode = #tpu.pipeline_mode<synchronous>, transform_indices = @transform_3, window_bounds = array<i64: 32, 32>}, {pipeline_mode = #tpu.pipeline_mode<synchronous>, transform_indices = @transform_4, window_bounds = array<i64: 1, 32>}, {pipeline_mode = #tpu.pipeline_mode<synchronous>, transform_indices = @transform_5, window_bounds = array<i64: 1, 32>}, {pipeline_mode = #tpu.pipeline_mode<synchronous>, transform_indices = @transform_6, window_bounds = array<i64: 1, 32>}, {transform_indices = @transform_7, window_bounds = array<i64: 1, 128, 32>}, {transform_indices = @transform_8, window_bounds = array<i64: 1, 128, 32>}, {transform_indices = @transform_9, window_bounds = array<i64: 1, 128, 32>}]} {
    %c0 = arith.constant 0 : index
    %c0_0 = arith.constant 0 : index
    %c0_1 = arith.constant 0 : index
    %0 = vector.load %arg2[%c0, %c0_0, %c0_1] : memref<1x128x32xf32, #tpu.memory_space<vmem>>, vector<1x128x32xf32>
    %1 = vector.shape_cast %0 : vector<1x128x32xf32> to vector<128x32xf32>
    %c0_2 = arith.constant 0 : index
    %c0_3 = arith.constant 0 : index
    %2 = vector.load %arg3[%c0_2, %c0_3] : memref<32x32xf32, #tpu.memory_space<vmem>>, vector<32x32xf32>
    %cst = arith.constant dense<0.000000e+00> : vector<128x32xf32>
    %3 = tpu.matmul %1, %2, %cst {dimension_numbers = #tpu.dot_dimension_numbers<[1], [0], [0], [1], [0, 0, 1, 1], [], []>} : vector<128x32xf32>, vector<32x32xf32>, vector<128x32xf32> -> vector<128x32xf32>
    %c0_4 = arith.constant 0 : index
    %c0_5 = arith.constant 0 : index
    %4 = vector.load %arg6[%c0_4, %c0_5] : memref<1x32xf32, #tpu.memory_space<vmem>>, vector<1x32xf32>
    %5 = vector.shape_cast %4 : vector<1x32xf32> to vector<32xf32>
    %6 = vector.shape_cast %5 : vector<32xf32> to vector<1x32xf32>
    %7 = vector.broadcast %6 : vector<1x32xf32> to vector<128x32xf32>
    %8 = arith.addf %3, %7 : vector<128x32xf32>
    %c0_6 = arith.constant 0 : index
    %c0_7 = arith.constant 0 : index
    %c0_8 = arith.constant 0 : index
    %9 = vector.load %arg9[%c0_6, %c0_7, %c0_8] : memref<1x128x32xf32, #tpu.memory_space<vmem>>, vector<1x128x32xf32>
    %10 = vector.shape_cast %9 : vector<1x128x32xf32> to vector<128x32xf32>
    %11 = vector.shape_cast %8 : vector<128x32xf32> to vector<1x128x32xf32>
    tpu.vector_store %arg9[%c0_6, %c0_7, %c0_8], %11 {strides = array<i32>} : memref<1x128x32xf32, #tpu.memory_space<vmem>>, vector<1x128x32xf32>,
    %c0_9 = arith.constant 0 : index
    %c0_10 = arith.constant 0 : index
    %12 = vector.load %arg4[%c0_9, %c0_10] : memref<32x32xf32, #tpu.memory_space<vmem>>, vector<32x32xf32>
    %cst_11 = arith.constant dense<0.000000e+00> : vector<128x32xf32>
    %13 = tpu.matmul %1, %12, %cst_11 {dimension_numbers = #tpu.dot_dimension_numbers<[1], [0], [0], [1], [0, 0, 1, 1], [], []>} : vector<128x32xf32>, vector<32x32xf32>, vector<128x32xf32> -> vector<128x32xf32>
    %c0_12 = arith.constant 0 : index
    %c0_13 = arith.constant 0 : index
    %14 = vector.load %arg7[%c0_12, %c0_13] : memref<1x32xf32, #tpu.memory_space<vmem>>, vector<1x32xf32>
    %15 = vector.shape_cast %14 : vector<1x32xf32> to vector<32xf32>
    %16 = vector.shape_cast %15 : vector<32xf32> to vector<1x32xf32>
    %17 = vector.broadcast %16 : vector<1x32xf32> to vector<128x32xf32>
    %18 = arith.addf %13, %17 : vector<128x32xf32>
    %c0_14 = arith.constant 0 : index
    %c0_15 = arith.constant 0 : index
    %c0_16 = arith.constant 0 : index
    %19 = vector.load %arg10[%c0_14, %c0_15, %c0_16] : memref<1x128x32xf32, #tpu.memory_space<vmem>>, vector<1x128x32xf32>
    %20 = vector.shape_cast %19 : vector<1x128x32xf32> to vector<128x32xf32>
    %21 = vector.shape_cast %18 : vector<128x32xf32> to vector<1x128x32xf32>
    tpu.vector_store %arg10[%c0_14, %c0_15, %c0_16], %21 {strides = array<i32>} : memref<1x128x32xf32, #tpu.memory_space<vmem>>, vector<1x128x32xf32>,
    %c0_17 = arith.constant 0 : index
    %c0_18 = arith.constant 0 : index
    %22 = vector.load %arg5[%c0_17, %c0_18] : memref<32x32xf32, #tpu.memory_space<vmem>>, vector<32x32xf32>
    %cst_19 = arith.constant dense<0.000000e+00> : vector<128x32xf32>
    %23 = tpu.matmul %1, %22, %cst_19 {dimension_numbers = #tpu.dot_dimension_numbers<[1], [0], [0], [1], [0, 0, 1, 1], [], []>} : vector<128x32xf32>, vector<32x32xf32>, vector<128x32xf32> -> vector<128x32xf32>
    %c0_20 = arith.constant 0 : index
    %c0_21 = arith.constant 0 : index
    %24 = vector.load %arg8[%c0_20, %c0_21] : memref<1x32xf32, #tpu.memory_space<vmem>>, vector<1x32xf32>
    %25 = vector.shape_cast %24 : vector<1x32xf32> to vector<32xf32>
    %26 = vector.shape_cast %25 : vector<32xf32> to vector<1x32xf32>
    %27 = vector.broadcast %26 : vector<1x32xf32> to vector<128x32xf32>
    %28 = arith.addf %23, %27 : vector<128x32xf32>
    %c0_22 = arith.constant 0 : index
    %c0_23 = arith.constant 0 : index
    %c0_24 = arith.constant 0 : index
    %29 = vector.load %arg11[%c0_22, %c0_23, %c0_24] : memref<1x128x32xf32, #tpu.memory_space<vmem>>, vector<1x128x32xf32>
    %30 = vector.shape_cast %29 : vector<1x128x32xf32> to vector<128x32xf32>
    %31 = vector.shape_cast %28 : vector<128x32xf32> to vector<1x128x32xf32>
    tpu.vector_store %arg11[%c0_22, %c0_23, %c0_24], %31 {strides = array<i32>} : memref<1x128x32xf32, #tpu.memory_space<vmem>>, vector<1x128x32xf32>,
    return
  }
  func.func @transform_0(%arg0: i32, %arg1: i32) -> (i32, i32, i32) {
    %c0_i32 = arith.constant 0 : i32
    %c0_i32_0 = arith.constant 0 : i32
    return %arg0, %arg1, %c0_i32 : i32, i32, i32
  }
  func.func @transform_1(%arg0: i32, %arg1: i32) -> (i32, i32) {
    %c0_i32 = arith.constant 0 : i32
    %c0_i32_0 = arith.constant 0 : i32
    %c0_i32_1 = arith.constant 0 : i32
    return %c0_i32, %c0_i32_0 : i32, i32
  }
  func.func @transform_2(%arg0: i32, %arg1: i32) -> (i32, i32) {
    %c0_i32 = arith.constant 0 : i32
    %c0_i32_0 = arith.constant 0 : i32
    %c0_i32_1 = arith.constant 0 : i32
    return %c0_i32, %c0_i32_0 : i32, i32
  }
  func.func @transform_3(%arg0: i32, %arg1: i32) -> (i32, i32) {
    %c0_i32 = arith.constant 0 : i32
    %c0_i32_0 = arith.constant 0 : i32
    %c0_i32_1 = arith.constant 0 : i32
    return %c0_i32, %c0_i32_0 : i32, i32
  }
  func.func @transform_4(%arg0: i32, %arg1: i32) -> (i32, i32) {
    %c0_i32 = arith.constant 0 : i32
    %c0_i32_0 = arith.constant 0 : i32
    %c0_i32_1 = arith.constant 0 : i32
    return %c0_i32, %c0_i32_0 : i32, i32
  }
  func.func @transform_5(%arg0: i32, %arg1: i32) -> (i32, i32) {
    %c0_i32 = arith.constant 0 : i32
    %c0_i32_0 = arith.constant 0 : i32
    %c0_i32_1 = arith.constant 0 : i32
    return %c0_i32, %c0_i32_0 : i32, i32
  }
  func.func @transform_6(%arg0: i32, %arg1: i32) -> (i32, i32) {
    %c0_i32 = arith.constant 0 : i32
    %c0_i32_0 = arith.constant 0 : i32
    %c0_i32_1 = arith.constant 0 : i32
    return %c0_i32, %c0_i32_0 : i32, i32
  }
  func.func @transform_7(%arg0: i32, %arg1: i32) -> (i32, i32, i32) {
    %c0_i32 = arith.constant 0 : i32
    %c0_i32_0 = arith.constant 0 : i32
    return %arg0, %arg1, %c0_i32 : i32, i32, i32
  }
  func.func @transform_8(%arg0: i32, %arg1: i32) -> (i32, i32, i32) {
    %c0_i32 = arith.constant 0 : i32
    %c0_i32_0 = arith.constant 0 : i32
    return %arg0, %arg1, %c0_i32 : i32, i32, i32
  }
  func.func @transform_9(%arg0: i32, %arg1: i32) -> (i32, i32, i32) {
    %c0_i32 = arith.constant 0 : i32
    %c0_i32_0 = arith.constant 0 : i32
    return %arg0, %arg1, %c0_i32 : i32, i32, i32
  }
}

</mosaic_0001>

<bundles_post_ra>
// kernel: tpu_custom_call.1
= control target key start
LH: loop header
LB: loop body
LE: loop exit
PB: predicated region body
PF: predicated region fallthrough
CT: control target
= control target key end

     0   :  { %s1539_s30 = smov 0   ;;  %s1541_s10 = smov 0   ;;  %s1838_s0 = inlined_call_operand.vmem [shape: f32[2,128,32], index: 0, kind: input, shape index: {}]   ;;  %s1839_s1 = inlined_call_operand.vmem [shape: f32[32,32], index: 1, kind: input, shape index: {}]   ;;  %s1840_s2 = inlined_call_operand.vmem [shape: f32[32,32], index: 2, kind: input, shape index: {}]   ;;  %s1841_s3 = inlined_call_operand.vmem [shape: f32[32,32], index: 3, kind: input, shape index: {}]   ;;  %s1842_s4 = inlined_call_operand.vmem [shape: f32[1,32], index: 4, kind: input, shape index: {}]   ;;  %s1843_s5 = inlined_call_operand.vmem [shape: f32[1,32], index: 5, kind: input, shape index: {}]   ;;  %s1844_s6 = inlined_call_operand.vmem [shape: f32[1,32], index: 6, kind: input, shape index: {}]   ;;  %s1845_s7 = inlined_call_operand.vmem [shape: f32[2,128,32], index: 7, kind: output, shape index: {0}]   ;;  %s1846_s8 = inlined_call_operand.vmem [shape: f32[2,128,32], index: 8, kind: output, shape index: {1}]   ;;  %s1847_s9 = inlined_call_operand.vmem [shape: f32[2,128,32], index: 9, kind: output, shape index: {2}]  }
   0x1   :  { %s1543_s11 = smov 0  }
   0x2 LB: > { %s32_s12 = sadd.s32 1, %s1483_s10  ;;  %p1191_p0 = scmp.ge.s32.totalorder %s1487_s11, 1  ;;  %s1487_s11 = sphi %s1543_s11, %s20_s11   ;;  %s1483_s10 = sphi %s1541_s10, %s1849_s10   ;;  %s1479_s30 = sphi %s1539_s30, %s1848_s30  }
   0x3   : > { %p34_p1 = scmp.ge.s32.totalorder %s32_s12, 2  ;;  %p317_p2 = scmp.lt.s32.totalorder %s1487_s11, 3 }
   0x5   : > { %s1851_s12 = smov (%p34_p1, %s32_s12), 0  ;;  %p318_p3 = pnand %p1191_p0, %p317_p2 }
   0x6   : > { %v435_v0 = vld [vmem:[%s1839_s1] sm:$0xff] (!%p318_p3)  ;;  %v436_v1 = vld [vmem:[%s1839_s1 + $0x8] sm:$0xff] (!%p318_p3)  ;;  %v437_v2 = vld [vmem:[%s1839_s1 + $0x10] sm:$0xff] (!%p318_p3)  ;;  %p380_p4 = scmp.lt.s32.totalorder (!%p318_p3), %s1479_s30, 1  ;;  %vm446_vm0 = vcmask (!%p318_p3), 261120  }
   0x7   : > { %321 = sbr.rel (%p318_p3) target bundleno = 280 (0x118), region = 48  ;;  %v1413_v3 = vpack.c.bf16 (!%p318_p3), %v436_v1, %v435_v0  ;;  %v438_v4 = vld [vmem:[%s1839_s1 + $0x18] sm:$0xff] (!%p318_p3)  ;;  %v656_v5 = vld [vmem:[%s1840_s2] sm:$0xff] (!%p318_p3)  ;;  %v657_v7 = vld [vmem:[%s1840_s2 + $0x8] sm:$0xff] (!%p318_p3) }
   0x8   : > { %v1417_v6 = vpack.c.bf16 (!%p318_p3), %v438_v4, %v437_v2  ;;  %v828_v8 = vld [vmem:[%s1841_s3] sm:$0xff] (!%p318_p3)  ;;  %v829_v9 = vld [vmem:[%s1841_s3 + $0x8] sm:$0xff] (!%p318_p3)  ;;  %v1421_v10 = vpack.c.bf16 (!%p318_p3), %v657_v7, %v656_v5  ;;  %v658_v14 = vld [vmem:[%s1840_s2 + $0x10] sm:$0xff] (!%p318_p3) }
   0x9   : > { %1414 = vmatprep.subr.bf16.mxu0 (!%p318_p3), %v1413_v3  ;;  %1437 = vmatprep.subr.bf16.mxu1 (!%p318_p3), %v1413_v3  ;;  %v1429_v11 = vpack.c.bf16 (!%p318_p3), %v829_v9, %v828_v8  ;;  %v659_v15 = vld [vmem:[%s1840_s2 + $0x18] sm:$0xff] (!%p318_p3)  ;;  %v830_v16 = vld [vmem:[%s1841_s3 + $0x10] sm:$0xff] (!%p318_p3)  ;;  %v1200_v34 = vld [vmem:[%s1842_s4] ss:$0 sm:$0xff] (!%p318_p3) }
   0xa   : > { %1416 = vmatpush3.bf16.msra.mxu0 (!%p318_p3), %v1413_v3  ;;  %1439 = vmatpush3.bf16.msra.mxu1 (!%p318_p3), %v1413_v3  ;;  %v831_v17 = vld [vmem:[%s1841_s3 + $0x18] sm:$0xff] (!%p318_p3)  ;;  %v1425_v22 = vpack.c.bf16 (!%p318_p3), %v659_v15, %v658_v14  ;;  %v1706_v3 = vld [vmem:[%s1843_s5] ss:$0 sm:$0xff] (!%p318_p3) }
   0xb   : > { %1418 = vmatprep.subr.bf16.mxu0 (!%p318_p3), %v1417_v6  ;;  %1438 = vmatprep.subr.bf16.mxu1 (!%p318_p3), %v1417_v6  ;;  %v1433_v23 = vpack.c.bf16 (!%p318_p3), %v831_v17, %v830_v16  ;;  %v1711_v4 = vld [vmem:[%s1844_s6] ss:$0 sm:$0xff] (!%p318_p3) }
   0xe   : > { %s1853_s30 = smov (!%p380_p4, %s1479_s30), 1  ;;  %1420 = vmatpush3.bf16.msra.mxu0 %v1417_v6  ;;  %1440 = vmatpush3.bf16.msra.mxu1 %v1417_v6 }
   0xf   : > { %s1581_s29 = sshll.u32 %s1853_s30, 7  ;;  %1422 = vmatprep.subr.bf16.mxu1 %v1421_v10  ;;  %1430 = vmatprep.subr.bf16.mxu0 %v1429_v11 }
  0x10   : > { %s1587_s15 = scalar_lea.vmem %s1838_s0, %s1581_s29  ;;  %s1677_s27 = scalar_lea.vmem %s1845_s7, %s1581_s29 }
  0x11   : > { %v419_v12 = vld [vmem:[%s1587_s15] sm:$0xff]  ;;  %v420_v18 = vld [vmem:[%s1587_s15 + $0x8] sm:$0xff]  ;;  %v421_v20 = vld [vmem:[%s1587_s15 + $0x10] sm:$0xff]  ;;  %s1725_s17 = scalar_lea.vmem %s1846_s8, %s1581_s29  ;;  %s1731_s20 = scalar_lea.vmem %s1847_s9, %s1581_s29 }
  0x12   : > { %v1591_v13 = vld [vmem:[%s1587_s15 + $0x40] sm:$0xff]  ;;  %1325 = vmatprep.mubr.msk.f32.mxu0 %vm446_vm0, %v419_v12  ;;  %v428_v19 = vld [vmem:[%s1587_s15 + $0x48] sm:$0xff]  ;;  %v429_v21 = vld [vmem:[%s1587_s15 + $0x50] sm:$0xff] }
  0x13   : > { %1337 = vmatprep.mubr.msk.f32.mxu1 %vm446_vm0, %v1591_v13  ;;  %1326 = vmatmul.mubr.msk.f32.vlgmr.msra.gmra.mrb[0].mxu0 %vm446_vm0, %v420_v18  ;;  %v422_v24 = vld [vmem:[%s1587_s15 + $0x18] sm:$0xff]  ;;  %v423_v26 = vld [vmem:[%s1587_s15 + $0x20] sm:$0xff]  ;;  %v424_v28 = vld [vmem:[%s1587_s15 + $0x28] sm:$0xff] }
  0x14   : > { %1338 = vmatmul.mubr.msk.f32.vlgmr.msra.gmra.mrb[0].mxu1 %vm446_vm0, %v428_v19  ;;  %1432 = vmatpush3.bf16.msra.mxu0 %v1429_v11  ;;  %v430_v25 = vld [vmem:[%s1587_s15 + $0x58] sm:$0xff]  ;;  %v431_v27 = vld [vmem:[%s1587_s15 + $0x60] sm:$0xff]  ;;  %v432_v29 = vld [vmem:[%s1587_s15 + $0x68] sm:$0xff] }
  0x15   : > { %1424 = vmatpush3.bf16.msra.mxu1 %v1421_v10  ;;  %1328 = vmatprep.mubr.msk.f32.mxu0 %vm446_vm0, %v421_v20  ;;  %v425_v30 = vld [vmem:[%s1587_s15 + $0x30] sm:$0xff]  ;;  %v426_v32 = vld [vmem:[%s1587_s15 + $0x38] sm:$0xff] }
  0x16   : > { %1340 = vmatprep.mubr.msk.f32.mxu1 %vm446_vm0, %v429_v21  ;;  %1426 = vmatprep.subr.bf16.mxu1 %v1425_v22  ;;  %v433_v31 = vld [vmem:[%s1587_s15 + $0x70] sm:$0xff]  ;;  %v434_v33 = vld [vmem:[%s1587_s15 + $0x78] sm:$0xff] }
  0x17   : > { %1434 = vmatprep.subr.bf16.mxu0 %v1433_v23  ;;  %1329 = vmatmul.mubr.msk.f32.gmra.mrb[2].mxu0 %vm446_vm0, %v422_v24 }
  0x18   : > { %1341 = vmatmul.mubr.msk.f32.gmra.mrb[2].mxu1 %vm446_vm0, %v430_v25  ;;  %1331 = vmatprep.mubr.msk.f32.mxu0 %vm446_vm0, %v423_v26 }
  0x19   : > { %1343 = vmatprep.mubr.msk.f32.mxu1 %vm446_vm0, %v431_v27  ;;  %1428 = vmatpush3.bf16.msra.mxu1 %v1425_v22 }
  0x1a   : > { %1436 = vmatpush3.bf16.msra.mxu0 %v1433_v23 }
  0x1b   : > { %1332 = vmatmul.mubr.msk.f32.gmra.mrb[4].mxu0 %vm446_vm0, %v424_v28 }
  0x1c   : > { %1344 = vmatmul.mubr.msk.f32.gmra.mrb[4].mxu1 %vm446_vm0, %v432_v29  ;;  %1334 = vmatprep.mubr.msk.f32.mxu0 %vm446_vm0, %v425_v30 }
  0x1d   : > { %1346 = vmatprep.mubr.msk.f32.mxu1 %vm446_vm0, %v433_v31 }
  0x1f   : > { %1335 = vmatmul.mubr.msk.f32.gmra.mrb[6].mxu0 %vm446_vm0, %v426_v32 }
  0x20   : > { %1347 = vmatmul.mubr.msk.f32.gmra.mrb[6].mxu1 %vm446_vm0, %v434_v33  ;;  %1389 = vmatprep.mubr.msk.f32.mxu0 %vm446_vm0, %v419_v12 }
  0x21   : > { %1357 = vmatprep.mubr.msk.f32.mxu1 %vm446_vm0, %v419_v12 }
  0x23   : > { %1390 = vmatmul.mubr.msk.f32.vlgmr.msra.gmra.mrb[8].mxu0 %vm446_vm0, %v420_v18 }
  0x24   : > { %1358 = vmatmul.mubr.msk.f32.vlgmr.msra.gmra.mrb[8].mxu1 %vm446_vm0, %v420_v18  ;;  %1392 = vmatprep.mubr.msk.f32.mxu0 %vm446_vm0, %v421_v20 }
  0x25   : > { %1360 = vmatprep.mubr.msk.f32.mxu1 %vm446_vm0, %v421_v20 }
  0x27   : > { %1393 = vmatmul.mubr.msk.f32.gmra.mrb[10].mxu0 %vm446_vm0, %v422_v24 }
  0x28   : > { %1361 = vmatmul.mubr.msk.f32.gmra.mrb[10].mxu1 %vm446_vm0, %v422_v24  ;;  %1395 = vmatprep.mubr.msk.f32.mxu0 %vm446_vm0, %v423_v26 }
  0x29   : > { %1363 = vmatprep.mubr.msk.f32.mxu1 %vm446_vm0, %v423_v26 }
  0x2b   : > { %1396 = vmatmul.mubr.msk.f32.gmra.mrb[12].mxu0 %vm446_vm0, %v424_v28 }
  0x2c   : > { %1364 = vmatmul.mubr.msk.f32.gmra.mrb[12].mxu1 %vm446_vm0, %v424_v28  ;;  %1398 = vmatprep.mubr.msk.f32.mxu0 %vm446_vm0, %v425_v30 }
  0x2d   : > { %1366 = vmatprep.mubr.msk.f32.mxu1 %vm446_vm0, %v425_v30 }
  0x2f   : > { %1399 = vmatmul.mubr.msk.f32.gmra.mrb[14].mxu0 %vm446_vm0, %v426_v32 }
  0x30   : > { %1367 = vmatmul.mubr.msk.f32.gmra.mrb[14].mxu1 %vm446_vm0, %v426_v32  ;;  %1401 = vmatprep.mubr.msk.f32.mxu0 %vm446_vm0, %v1591_v13 }
  0x31   : > { %1369 = vmatprep.mubr.msk.f32.mxu1 %vm446_vm0, %v1591_v13 }
  0x33   : > { %1402 = vmatmul.mubr.msk.f32.gmra.mrb[16].mxu0 %vm446_vm0, %v428_v19 }
  0x34   : > { %1370 = vmatmul.mubr.msk.f32.gmra.mrb[16].mxu1 %vm446_vm0, %v428_v19  ;;  %1404 = vmatprep.mubr.msk.f32.mxu0 %vm446_vm0, %v429_v21 }
  0x35   : > { %1372 = vmatprep.mubr.msk.f32.mxu1 %vm446_vm0, %v429_v21 }
  0x37   : > { %1405 = vmatmul.mubr.msk.f32.gmra.mrb[18].mxu0 %vm446_vm0, %v430_v25 }
  0x38   : > { %1373 = vmatmul.mubr.msk.f32.gmra.mrb[18].mxu1 %vm446_vm0, %v430_v25  ;;  %1407 = vmatprep.mubr.msk.f32.mxu0 %vm446_vm0, %v431_v27 }
  0x39   : > { %1375 = vmatprep.mubr.msk.f32.mxu1 %vm446_vm0, %v431_v27 }
  0x3b   : > { %1408 = vmatmul.mubr.msk.f32.gmra.mrb[20].mxu0 %vm446_vm0, %v432_v29 }
  0x3c   : > { %1376 = vmatmul.mubr.msk.f32.gmra.mrb[20].mxu1 %vm446_vm0, %v432_v29  ;;  %1410 = vmatprep.mubr.msk.f32.mxu0 %vm446_vm0, %v433_v31 }
  0x3d   : > { %1378 = vmatprep.mubr.msk.f32.mxu1 %vm446_vm0, %v433_v31 }
  0x3f   : > { %1411 = vmatmul.mubr.msk.f32.gmra.mrb[22].mxu0 %vm446_vm0, %v434_v33 }
  0x40   : > { %1379 = vmatmul.mubr.msk.f32.gmra.mrb[22].mxu1 %vm446_vm0, %v434_v33 }
  0xe6   : > { %v1327_v35 = vpop.f32.mrb[0].mxu0 }
  0xe7   : > { %v1339_v36 = vpop.f32.mrb[0].mxu1  ;;  %v567_v37 = vadd.f32 %v1327_v35, %v1200_v34  ;;  %v561_v39 = vpop.f32.mrb[1].mxu0 }
  0xe8   : > { %v607_v38 = vadd.f32 %v1339_v36, %v1200_v34  ;;  %v601_v40 = vpop.f32.mrb[1].mxu1  ;;  %v562_v41 = vadd.f32 %v1200_v34, %v561_v39 }
  0xe9   : > { %v602_v42 = vadd.f32 %v1200_v34, %v601_v40  ;;  %641 = vst.msk [vmem:[%s1677_s27 + $0x8] sm:$0xff] %vm446_vm0, %v567_v37 }
  0xea   : > { %649 = vst.msk [vmem:[%s1677_s27 + $0x48] sm:$0xff] %vm446_vm0, %v607_v38  ;;  %640 = vst.msk [vmem:[%s1677_s27] sm:$0xff] %vm446_vm0, %v562_v41  ;;  %v1330_v43 = vpop.f32.mrb[2].mxu0 }
  0xeb   : > { %648 = vst.msk [vmem:[%s1677_s27 + $0x40] sm:$0xff] %vm446_vm0, %v602_v42  ;;  %v1342_v44 = vpop.f32.mrb[2].mxu1  ;;  %v577_v45 = vadd.f32 %v1330_v43, %v1200_v34  ;;  %v571_v47 = vpop.f32.mrb[3].mxu0 }
  0xec   : > { %v617_v46 = vadd.f32 %v1342_v44, %v1200_v34  ;;  %v611_v48 = vpop.f32.mrb[3].mxu1  ;;  %v572_v49 = vadd.f32 %v1200_v34, %v571_v47 }
  0xed   : > { %v612_v50 = vadd.f32 %v1200_v34, %v611_v48  ;;  %643 = vst.msk [vmem:[%s1677_s27 + $0x18] sm:$0xff] %vm446_vm0, %v577_v45 }
  0xee   : > { %651 = vst.msk [vmem:[%s1677_s27 + $0x58] sm:$0xff] %vm446_vm0, %v617_v46  ;;  %642 = vst.msk [vmem:[%s1677_s27 + $0x10] sm:$0xff] %vm446_vm0, %v572_v49  ;;  %v1333_v51 = vpop.f32.mrb[4].mxu0 }
  0xef   : > { %650 = vst.msk [vmem:[%s1677_s27 + $0x50] sm:$0xff] %vm446_vm0, %v612_v50  ;;  %v1345_v52 = vpop.f32.mrb[4].mxu1  ;;  %v587_v53 = vadd.f32 %v1333_v51, %v1200_v34  ;;  %v581_v55 = vpop.f32.mrb[5].mxu0 }
  0xf0   : > { %v627_v54 = vadd.f32 %v1345_v52, %v1200_v34  ;;  %v621_v56 = vpop.f32.mrb[5].mxu1  ;;  %v582_v57 = vadd.f32 %v1200_v34, %v581_v55 }
  0xf1   : > { %v622_v58 = vadd.f32 %v1200_v34, %v621_v56  ;;  %645 = vst.msk [vmem:[%s1677_s27 + $0x28] sm:$0xff] %vm446_vm0, %v587_v53 }
  0xf2   : > { %653 = vst.msk [vmem:[%s1677_s27 + $0x68] sm:$0xff] %vm446_vm0, %v627_v54  ;;  %644 = vst.msk [vmem:[%s1677_s27 + $0x20] sm:$0xff] %vm446_vm0, %v582_v57  ;;  %v1336_v59 = vpop.f32.mrb[6].mxu0 }
  0xf3   : > { %652 = vst.msk [vmem:[%s1677_s27 + $0x60] sm:$0xff] %vm446_vm0, %v622_v58  ;;  %v1348_v60 = vpop.f32.mrb[6].mxu1  ;;  %v597_v61 = vadd.f32 %v1336_v59, %v1200_v34  ;;  %v591_v63 = vpop.f32.mrb[7].mxu0 }
  0xf4   : > { %v637_v62 = vadd.f32 %v1348_v60, %v1200_v34  ;;  %v631_v0 = vpop.f32.mrb[7].mxu1  ;;  %v592_v1 = vadd.f32 %v1200_v34, %v591_v63 }
  0xf5   : > { %v632_v2 = vadd.f32 %v1200_v34, %v631_v0  ;;  %647 = vst.msk [vmem:[%s1677_s27 + $0x38] sm:$0xff] %vm446_vm0, %v597_v61 }
  0xf6   : > { %655 = vst.msk [vmem:[%s1677_s27 + $0x78] sm:$0xff] %vm446_vm0, %v637_v62  ;;  %646 = vst.msk [vmem:[%s1677_s27 + $0x30] sm:$0xff] %vm446_vm0, %v592_v1  ;;  %v1391_v6 = vpop.f32.mrb[8].mxu0 }
  0xf7   : > { %654 = vst.msk [vmem:[%s1677_s27 + $0x70] sm:$0xff] %vm446_vm0, %v632_v2  ;;  %v1359_v5 = vpop.f32.mrb[8].mxu1  ;;  %v911_v8 = vadd.f32 %v1391_v6, %v1711_v4  ;;  %v905_v10 = vpop.f32.mrb[9].mxu0 }
  0xf8   : > { %v739_v7 = vadd.f32 %v1359_v5, %v1706_v3  ;;  %v733_v9 = vpop.f32.mrb[9].mxu1  ;;  %v906_v12 = vadd.f32 %v1711_v4, %v905_v10 }
  0xf9   : > { %v734_v11 = vadd.f32 %v1706_v3, %v733_v9  ;;  %985 = vst.msk [vmem:[%s1731_s20 + $0x8] sm:$0xff] %vm446_vm0, %v911_v8 }
  0xfa   : > { %813 = vst.msk [vmem:[%s1725_s17 + $0x8] sm:$0xff] %vm446_vm0, %v739_v7  ;;  %984 = vst.msk [vmem:[%s1731_s20] sm:$0xff] %vm446_vm0, %v906_v12  ;;  %v1394_v14 = vpop.f32.mrb[10].mxu0 }
  0xfb   : > { %812 = vst.msk [vmem:[%s1725_s17] sm:$0xff] %vm446_vm0, %v734_v11  ;;  %v1362_v13 = vpop.f32.mrb[10].mxu1  ;;  %v921_v16 = vadd.f32 %v1394_v14, %v1711_v4  ;;  %v915_v18 = vpop.f32.mrb[11].mxu0 }
  0xfc   : > { %v749_v15 = vadd.f32 %v1362_v13, %v1706_v3  ;;  %v743_v17 = vpop.f32.mrb[11].mxu1  ;;  %v916_v20 = vadd.f32 %v1711_v4, %v915_v18 }
  0xfd   : > { %v744_v19 = vadd.f32 %v1706_v3, %v743_v17  ;;  %987 = vst.msk [vmem:[%s1731_s20 + $0x18] sm:$0xff] %vm446_vm0, %v921_v16 }
  0xfe   : > { %815 = vst.msk [vmem:[%s1725_s17 + $0x18] sm:$0xff] %vm446_vm0, %v749_v15  ;;  %986 = vst.msk [vmem:[%s1731_s20 + $0x10] sm:$0xff] %vm446_vm0, %v916_v20  ;;  %v1397_v22 = vpop.f32.mrb[12].mxu0 }
  0xff   : > { %814 = vst.msk [vmem:[%s1725_s17 + $0x10] sm:$0xff] %vm446_vm0, %v744_v19  ;;  %v1365_v21 = vpop.f32.mrb[12].mxu1  ;;  %v931_v24 = vadd.f32 %v1397_v22, %v1711_v4  ;;  %v925_v26 = vpop.f32.mrb[13].mxu0 }
 0x100   : > { %v759_v23 = vadd.f32 %v1365_v21, %v1706_v3  ;;  %v753_v25 = vpop.f32.mrb[13].mxu1  ;;  %v926_v28 = vadd.f32 %v1711_v4, %v925_v26 }
 0x101   : > { %v754_v27 = vadd.f32 %v1706_v3, %v753_v25  ;;  %989 = vst.msk [vmem:[%s1731_s20 + $0x28] sm:$0xff] %vm446_vm0, %v931_v24 }
 0x102   : > { %817 = vst.msk [vmem:[%s1725_s17 + $0x28] sm:$0xff] %vm446_vm0, %v759_v23  ;;  %988 = vst.msk [vmem:[%s1731_s20 + $0x20] sm:$0xff] %vm446_vm0, %v926_v28  ;;  %v1400_v30 = vpop.f32.mrb[14].mxu0 }
 0x103   : > { %816 = vst.msk [vmem:[%s1725_s17 + $0x20] sm:$0xff] %vm446_vm0, %v754_v27  ;;  %v1368_v29 = vpop.f32.mrb[14].mxu1  ;;  %v941_v32 = vadd.f32 %v1400_v30, %v1711_v4  ;;  %v935_v34 = vpop.f32.mrb[15].mxu0 }
 0x104   : > { %v769_v31 = vadd.f32 %v1368_v29, %v1706_v3  ;;  %v763_v33 = vpop.f32.mrb[15].mxu1  ;;  %v936_v36 = vadd.f32 %v1711_v4, %v935_v34 }
 0x105   : > { %v764_v35 = vadd.f32 %v1706_v3, %v763_v33  ;;  %991 = vst.msk [vmem:[%s1731_s20 + $0x38] sm:$0xff] %vm446_vm0, %v941_v32 }
 0x106   : > { %819 = vst.msk [vmem:[%s1725_s17 + $0x38] sm:$0xff] %vm446_vm0, %v769_v31  ;;  %990 = vst.msk [vmem:[%s1731_s20 + $0x30] sm:$0xff] %vm446_vm0, %v936_v36  ;;  %v1403_v38 = vpop.f32.mrb[16].mxu0 }
 0x107   : > { %818 = vst.msk [vmem:[%s1725_s17 + $0x30] sm:$0xff] %vm446_vm0, %v764_v35  ;;  %v1371_v37 = vpop.f32.mrb[16].mxu1  ;;  %v951_v40 = vadd.f32 %v1403_v38, %v1711_v4  ;;  %v945_v42 = vpop.f32.mrb[17].mxu0 }
 0x108   : > { %v779_v39 = vadd.f32 %v1371_v37, %v1706_v3  ;;  %v773_v41 = vpop.f32.mrb[17].mxu1  ;;  %v946_v44 = vadd.f32 %v1711_v4, %v945_v42 }
 0x109   : > { %v774_v43 = vadd.f32 %v1706_v3, %v773_v41  ;;  %993 = vst.msk [vmem:[%s1731_s20 + $0x48] sm:$0xff] %vm446_vm0, %v951_v40 }
 0x10a   : > { %821 = vst.msk [vmem:[%s1725_s17 + $0x48] sm:$0xff] %vm446_vm0, %v779_v39  ;;  %992 = vst.msk [vmem:[%s1731_s20 + $0x40] sm:$0xff] %vm446_vm0, %v946_v44  ;;  %v1406_v46 = vpop.f32.mrb[18].mxu0 }
 0x10b   : > { %820 = vst.msk [vmem:[%s1725_s17 + $0x40] sm:$0xff] %vm446_vm0, %v774_v43  ;;  %v1374_v45 = vpop.f32.mrb[18].mxu1  ;;  %v961_v48 = vadd.f32 %v1406_v46, %v1711_v4  ;;  %v955_v50 = vpop.f32.mrb[19].mxu0 }
 0x10c   : > { %v789_v47 = vadd.f32 %v1374_v45, %v1706_v3  ;;  %v783_v49 = vpop.f32.mrb[19].mxu1  ;;  %v956_v52 = vadd.f32 %v1711_v4, %v955_v50 }
 0x10d   : > { %v784_v51 = vadd.f32 %v1706_v3, %v783_v49  ;;  %995 = vst.msk [vmem:[%s1731_s20 + $0x58] sm:$0xff] %vm446_vm0, %v961_v48 }
 0x10e   : > { %823 = vst.msk [vmem:[%s1725_s17 + $0x58] sm:$0xff] %vm446_vm0, %v789_v47  ;;  %994 = vst.msk [vmem:[%s1731_s20 + $0x50] sm:$0xff] %vm446_vm0, %v956_v52  ;;  %v1409_v54 = vpop.f32.mrb[20].mxu0 }
 0x10f   : > { %822 = vst.msk [vmem:[%s1725_s17 + $0x50] sm:$0xff] %vm446_vm0, %v784_v51  ;;  %v1377_v53 = vpop.f32.mrb[20].mxu1  ;;  %v971_v56 = vadd.f32 %v1409_v54, %v1711_v4  ;;  %v965_v58 = vpop.f32.mrb[21].mxu0 }
 0x110   : > { %v799_v55 = vadd.f32 %v1377_v53, %v1706_v3  ;;  %v793_v57 = vpop.f32.mrb[21].mxu1  ;;  %v966_v60 = vadd.f32 %v1711_v4, %v965_v58 }
 0x111   : > { %v794_v59 = vadd.f32 %v1706_v3, %v793_v57  ;;  %997 = vst.msk [vmem:[%s1731_s20 + $0x68] sm:$0xff] %vm446_vm0, %v971_v56 }
 0x112   : > { %825 = vst.msk [vmem:[%s1725_s17 + $0x68] sm:$0xff] %vm446_vm0, %v799_v55  ;;  %996 = vst.msk [vmem:[%s1731_s20 + $0x60] sm:$0xff] %vm446_vm0, %v966_v60  ;;  %v1412_v62 = vpop.f32.mrb[22].mxu0 }
 0x113   : > { %824 = vst.msk [vmem:[%s1725_s17 + $0x60] sm:$0xff] %vm446_vm0, %v794_v59  ;;  %v1380_v61 = vpop.f32.mrb[22].mxu1  ;;  %v981_v0 = vadd.f32 %v1412_v62, %v1711_v4  ;;  %v975_v2 = vpop.f32.mrb[23].mxu0 }
 0x114   : > { %v809_v63 = vadd.f32 %v1380_v61, %v1706_v3  ;;  %v803_v1 = vpop.f32.mrb[23].mxu1  ;;  %v976_v6 = vadd.f32 %v1711_v4, %v975_v2 }
 0x115   : > { %v804_v5 = vadd.f32 %v1706_v3, %v803_v1  ;;  %999 = vst.msk [vmem:[%s1731_s20 + $0x78] sm:$0xff] %vm446_vm0, %v981_v0 }
 0x116   : > { %827 = vst.msk [vmem:[%s1725_s17 + $0x78] sm:$0xff] %vm446_vm0, %v809_v63  ;;  %998 = vst.msk [vmem:[%s1731_s20 + $0x70] sm:$0xff] %vm446_vm0, %v976_v6 }
 0x117   : > { %826 = vst.msk [vmem:[%s1725_s17 + $0x70] sm:$0xff] %vm446_vm0, %v804_v5 }
 0x118 PF: > { %s20_s11 = sadd.s32 1, %s1487_s11   ;;  %s1848_s30 = smov %s1483_s10 }
 0x119   : > { %p17_p5 = scmp.ge.s32.totalorder %s20_s11, 4   ;;  %s1849_s10 = smov %s1851_s12 }
 0x11b   :  { %19 = sbr.rel (!%p17_p5) target bundleno = 2 (0x2), region = 102 }

// kernel: tpu_custom_call.1
= control target key start
LH: loop header
LB: loop body
LE: loop exit
PB: predicated region body
PF: predicated region fallthrough
CT: control target
= control target key end

     0   :  { %s1539_s30 = smov 0   ;;  %s1541_s10 = smov 0   ;;  %s1838_s0 = inlined_call_operand.vmem [shape: f32[2,128,32], index: 0, kind: input, shape index: {}]   ;;  %s1839_s1 = inlined_call_operand.vmem [shape: f32[32,32], index: 1, kind: input, shape index: {}]   ;;  %s1840_s2 = inlined_call_operand.vmem [shape: f32[32,32], index: 2, kind: input, shape index: {}]   ;;  %s1841_s3 = inlined_call_operand.vmem [shape: f32[32,32], index: 3, kind: input, shape index: {}]   ;;  %s1842_s4 = inlined_call_operand.vmem [shape: f32[1,32], index: 4, kind: input, shape index: {}]   ;;  %s1843_s5 = inlined_call_operand.vmem [shape: f32[1,32], index: 5, kind: input, shape index: {}]   ;;  %s1844_s6 = inlined_call_operand.vmem [shape: f32[1,32], index: 6, kind: input, shape index: {}]   ;;  %s1845_s7 = inlined_call_operand.vmem [shape: f32[2,128,32], index: 7, kind: output, shape index: {0}]   ;;  %s1846_s8 = inlined_call_operand.vmem [shape: f32[2,128,32], index: 8, kind: output, shape index: {1}]   ;;  %s1847_s9 = inlined_call_operand.vmem [shape: f32[2,128,32], index: 9, kind: output, shape index: {2}]  }
   0x1   :  { %s1543_s11 = smov 0  }
   0x2 LB: > { %s32_s12 = sadd.s32 1, %s1483_s10  ;;  %p1191_p0 = scmp.ge.s32.totalorder %s1487_s11, 1  ;;  %s1487_s11 = sphi %s1543_s11, %s20_s11   ;;  %s1483_s10 = sphi %s1541_s10, %s1849_s10   ;;  %s1479_s30 = sphi %s1539_s30, %s1848_s30  }
   0x3   : > { %p34_p1 = scmp.ge.s32.totalorder %s32_s12, 2  ;;  %p317_p2 = scmp.lt.s32.totalorder %s1487_s11, 3 }
   0x5   : > { %s1851_s12 = smov (%p34_p1, %s32_s12), 0  ;;  %p318_p3 = pnand %p1191_p0, %p317_p2 }
   0x6   : > { %v435_v0 = vld [vmem:[%s1839_s1] sm:$0xff] (!%p318_p3)  ;;  %v436_v1 = vld [vmem:[%s1839_s1 + $0x8] sm:$0xff] (!%p318_p3)  ;;  %v437_v2 = vld [vmem:[%s1839_s1 + $0x10] sm:$0xff] (!%p318_p3)  ;;  %p380_p4 = scmp.lt.s32.totalorder (!%p318_p3), %s1479_s30, 1  ;;  %vm446_vm0 = vcmask (!%p318_p3), 261120  }
   0x7   : > { %321 = sbr.rel (%p318_p3) target bundleno = 280 (0x118), region = 48  ;;  %v1413_v3 = vpack.c.bf16 (!%p318_p3), %v436_v1, %v435_v0  ;;  %v438_v4 = vld [vmem:[%s1839_s1 + $0x18] sm:$0xff] (!%p318_p3)  ;;  %v656_v5 = vld [vmem:[%s1840_s2] sm:$0xff] (!%p318_p3)  ;;  %v657_v7 = vld [vmem:[%s1840_s2 + $0x8] sm:$0xff] (!%p318_p3) }
   0x8   : > { %v1417_v6 = vpack.c.bf16 (!%p318_p3), %v438_v4, %v437_v2  ;;  %v828_v8 = vld [vmem:[%s1841_s3] sm:$0xff] (!%p318_p3)  ;;  %v829_v9 = vld [vmem:[%s1841_s3 + $0x8] sm:$0xff] (!%p318_p3)  ;;  %v1421_v10 = vpack.c.bf16 (!%p318_p3), %v657_v7, %v656_v5  ;;  %v658_v14 = vld [vmem:[%s1840_s2 + $0x10] sm:$0xff] (!%p318_p3) }
   0x9   : > { %1414 = vmatprep.subr.bf16.mxu0 (!%p318_p3), %v1413_v3  ;;  %1437 = vmatprep.subr.bf16.mxu1 (!%p318_p3), %v1413_v3  ;;  %v1429_v11 = vpack.c.bf16 (!%p318_p3), %v829_v9, %v828_v8  ;;  %v659_v15 = vld [vmem:[%s1840_s2 + $0x18] sm:$0xff] (!%p318_p3)  ;;  %v830_v16 = vld [vmem:[%s1841_s3 + $0x10] sm:$0xff] (!%p318_p3)  ;;  %v1200_v34 = vld [vmem:[%s1842_s4] ss:$0 sm:$0xff] (!%p318_p3) }
   0xa   : > { %1416 = vmatpush3.bf16.msra.mxu0 (!%p318_p3), %v1413_v3  ;;  %1439 = vmatpush3.bf16.msra.mxu1 (!%p318_p3), %v1413_v3  ;;  %v831_v17 = vld [vmem:[%s1841_s3 + $0x18] sm:$0xff] (!%p318_p3)  ;;  %v1425_v22 = vpack.c.bf16 (!%p318_p3), %v659_v15, %v658_v14  ;;  %v1706_v3 = vld [vmem:[%s1843_s5] ss:$0 sm:$0xff] (!%p318_p3) }
   0xb   : > { %1418 = vmatprep.subr.bf16.mxu0 (!%p318_p3), %v1417_v6  ;;  %1438 = vmatprep.subr.bf16.mxu1 (!%p318_p3), %v1417_v6  ;;  %v1433_v23 = vpack.c.bf16 (!%p318_p3), %v831_v17, %v830_v16  ;;  %v1711_v4 = vld [vmem:[%s1844_s6] ss:$0 sm:$0xff] (!%p318_p3) }
   0xe   : > { %s1853_s30 = smov (!%p380_p4, %s1479_s30), 1  ;;  %1420 = vmatpush3.bf16.msra.mxu0 %v1417_v6  ;;  %1440 = vmatpush3.bf16.msra.mxu1 %v1417_v6 }
   0xf   : > { %s1581_s29 = sshll.u32 %s1853_s30, 7  ;;  %1422 = vmatprep.subr.bf16.mxu1 %v1421_v10  ;;  %1430 = vmatprep.subr.bf16.mxu0 %v1429_v11 }
  0x10   : > { %s1587_s15 = scalar_lea.vmem %s1838_s0, %s1581_s29  ;;  %s1677_s27 = scalar_lea.vmem %s1845_s7, %s1581_s29 }
  0x11   : > { %v419_v12 = vld [vmem:[%s1587_s15] sm:$0xff]  ;;  %v420_v18 = vld [vmem:[%s1587_s15 + $0x8] sm:$0xff]  ;;  %v421_v20 = vld [vmem:[%s1587_s15 + $0x10] sm:$0xff]  ;;  %s1725_s17 = scalar_lea.vmem %s1846_s8, %s1581_s29  ;;  %s1731_s20 = scalar_lea.vmem %s1847_s9, %s1581_s29 }
  0x12   : > { %v1591_v13 = vld [vmem:[%s1587_s15 + $0x40] sm:$0xff]  ;;  %1325 = vmatprep.mubr.msk.f32.mxu0 %vm446_vm0, %v419_v12  ;;  %v428_v19 = vld [vmem:[%s1587_s15 + $0x48] sm:$0xff]  ;;  %v429_v21 = vld [vmem:[%s1587_s15 + $0x50] sm:$0xff] }
  0x13   : > { %1337 = vmatprep.mubr.msk.f32.mxu1 %vm446_vm0, %v1591_v13  ;;  %1326 = vmatmul.mubr.msk.f32.vlgmr.msra.gmra.mrb[0].mxu0 %vm446_vm0, %v420_v18  ;;  %v422_v24 = vld [vmem:[%s1587_s15 + $0x18] sm:$0xff]  ;;  %v423_v26 = vld [vmem:[%s1587_s15 + $0x20] sm:$0xff]  ;;  %v424_v28 = vld [vmem:[%s1587_s15 + $0x28] sm:$0xff] }
  0x14   : > { %1338 = vmatmul.mubr.msk.f32.vlgmr.msra.gmra.mrb[0].mxu1 %vm446_vm0, %v428_v19  ;;  %1432 = vmatpush3.bf16.msra.mxu0 %v1429_v11  ;;  %v430_v25 = vld [vmem:[%s1587_s15 + $0x58] sm:$0xff]  ;;  %v431_v27 = vld [vmem:[%s1587_s15 + $0x60] sm:$0xff]  ;;  %v432_v29 = vld [vmem:[%s1587_s15 + $0x68] sm:$0xff] }
  0x15   : > { %1424 = vmatpush3.bf16.msra.mxu1 %v1421_v10  ;;  %1328 = vmatprep.mubr.msk.f32.mxu0 %vm446_vm0, %v421_v20  ;;  %v425_v30 = vld [vmem:[%s1587_s15 + $0x30] sm:$0xff]  ;;  %v426_v32 = vld [vmem:[%s1587_s15 + $0x38] sm:$0xff] }
  0x16   : > { %1340 = vmatprep.mubr.msk.f32.mxu1 %vm446_vm0, %v429_v21  ;;  %1426 = vmatprep.subr.bf16.mxu1 %v1425_v22  ;;  %v433_v31 = vld [vmem:[%s1587_s15 + $0x70] sm:$0xff]  ;;  %v434_v33 = vld [vmem:[%s1587_s15 + $0x78] sm:$0xff] }
  0x17   : > { %1434 = vmatprep.subr.bf16.mxu0 %v1433_v23  ;;  %1329 = vmatmul.mubr.msk.f32.gmra.mrb[2].mxu0 %vm446_vm0, %v422_v24 }
  0x18   : > { %1341 = vmatmul.mubr.msk.f32.gmra.mrb[2].mxu1 %vm446_vm0, %v430_v25  ;;  %1331 = vmatprep.mubr.msk.f32.mxu0 %vm446_vm0, %v423_v26 }
  0x19   : > { %1343 = vmatprep.mubr.msk.f32.mxu1 %vm446_vm0, %v431_v27  ;;  %1428 = vmatpush3.bf16.msra.mxu1 %v1425_v22 }
  0x1a   : > { %1436 = vmatpush3.bf16.msra.mxu0 %v1433_v23 }
  0x1b   : > { %1332 = vmatmul.mubr.msk.f32.gmra.mrb[4].mxu0 %vm446_vm0, %v424_v28 }
  0x1c   : > { %1344 = vmatmul.mubr.msk.f32.gmra.mrb[4].mxu1 %vm446_vm0, %v432_v29  ;;  %1334 = vmatprep.mubr.msk.f32.mxu0 %vm446_vm0, %v425_v30 }
  0x1d   : > { %1346 = vmatprep.mubr.msk.f32.mxu1 %vm446_vm0, %v433_v31 }
  0x1f   : > { %1335 = vmatmul.mubr.msk.f32.gmra.mrb[6].mxu0 %vm446_vm0, %v426_v32 }
  0x20   : > { %1347 = vmatmul.mubr.msk.f32.gmra.mrb[6].mxu1 %vm446_vm0, %v434_v33  ;;  %1389 = vmatprep.mubr.msk.f32.mxu0 %vm446_vm0, %v419_v12 }
  0x21   : > { %1357 = vmatprep.mubr.msk.f32.mxu1 %vm446_vm0, %v419_v12 }
  0x23   : > { %1390 = vmatmul.mubr.msk.f32.vlgmr.msra.gmra.mrb[8].mxu0 %vm446_vm0, %v420_v18 }
  0x24   : > { %1358 = vmatmul.mubr.msk.f32.vlgmr.msra.gmra.mrb[8].mxu1 %vm446_vm0, %v420_v18  ;;  %1392 = vmatprep.mubr.msk.f32.mxu0 %vm446_vm0, %v421_v20 }
  0x25   : > { %1360 = vmatprep.mubr.msk.f32.mxu1 %vm446_vm0, %v421_v20 }
  0x27   : > { %1393 = vmatmul.mubr.msk.f32.gmra.mrb[10].mxu0 %vm446_vm0, %v422_v24 }
  0x28   : > { %1361 = vmatmul.mubr.msk.f32.gmra.mrb[10].mxu1 %vm446_vm0, %v422_v24  ;;  %1395 = vmatprep.mubr.msk.f32.mxu0 %vm446_vm0, %v423_v26 }
  0x29   : > { %1363 = vmatprep.mubr.msk.f32.mxu1 %vm446_vm0, %v423_v26 }
  0x2b   : > { %1396 = vmatmul.mubr.msk.f32.gmra.mrb[12].mxu0 %vm446_vm0, %v424_v28 }
  0x2c   : > { %1364 = vmatmul.mubr.msk.f32.gmra.mrb[12].mxu1 %vm446_vm0, %v424_v28  ;;  %1398 = vmatprep.mubr.msk.f32.mxu0 %vm446_vm0, %v425_v30 }
  0x2d   : > { %1366 = vmatprep.mubr.msk.f32.mxu1 %vm446_vm0, %v425_v30 }
  0x2f   : > { %1399 = vmatmul.mubr.msk.f32.gmra.mrb[14].mxu0 %vm446_vm0, %v426_v32 }
  0x30   : > { %1367 = vmatmul.mubr.msk.f32.gmra.mrb[14].mxu1 %vm446_vm0, %v426_v32  ;;  %1401 = vmatprep.mubr.msk.f32.mxu0 %vm446_vm0, %v1591_v13 }
  0x31   : > { %1369 = vmatprep.mubr.msk.f32.mxu1 %vm446_vm0, %v1591_v13 }
  0x33   : > { %1402 = vmatmul.mubr.msk.f32.gmra.mrb[16].mxu0 %vm446_vm0, %v428_v19 }
  0x34   : > { %1370 = vmatmul.mubr.msk.f32.gmra.mrb[16].mxu1 %vm446_vm0, %v428_v19  ;;  %1404 = vmatprep.mubr.msk.f32.mxu0 %vm446_vm0, %v429_v21 }
  0x35   : > { %1372 = vmatprep.mubr.msk.f32.mxu1 %vm446_vm0, %v429_v21 }
  0x37   : > { %1405 = vmatmul.mubr.msk.f32.gmra.mrb[18].mxu0 %vm446_vm0, %v430_v25 }
  0x38   : > { %1373 = vmatmul.mubr.msk.f32.gmra.mrb[18].mxu1 %vm446_vm0, %v430_v25  ;;  %1407 = vmatprep.mubr.msk.f32.mxu0 %vm446_vm0, %v431_v27 }
  0x39   : > { %1375 = vmatprep.mubr.msk.f32.mxu1 %vm446_vm0, %v431_v27 }
  0x3b   : > { %1408 = vmatmul.mubr.msk.f32.gmra.mrb[20].mxu0 %vm446_vm0, %v432_v29 }
  0x3c   : > { %1376 = vmatmul.mubr.msk.f32.gmra.mrb[20].mxu1 %vm446_vm0, %v432_v29  ;;  %1410 = vmatprep.mubr.msk.f32.mxu0 %vm446_vm0, %v433_v31 }
  0x3d   : > { %1378 = vmatprep.mubr.msk.f32.mxu1 %vm446_vm0, %v433_v31 }
  0x3f   : > { %1411 = vmatmul.mubr.msk.f32.gmra.mrb[22].mxu0 %vm446_vm0, %v434_v33 }
  0x40   : > { %1379 = vmatmul.mubr.msk.f32.gmra.mrb[22].mxu1 %vm446_vm0, %v434_v33 }
  0xe6   : > { %v1327_v35 = vpop.f32.mrb[0].mxu0 }
  0xe7   : > { %v1339_v36 = vpop.f32.mrb[0].mxu1  ;;  %v567_v37 = vadd.f32 %v1327_v35, %v1200_v34  ;;  %v561_v39 = vpop.f32.mrb[1].mxu0 }
  0xe8   : > { %v607_v38 = vadd.f32 %v1339_v36, %v1200_v34  ;;  %v601_v40 = vpop.f32.mrb[1].mxu1  ;;  %v562_v41 = vadd.f32 %v1200_v34, %v561_v39 }
  0xe9   : > { %v602_v42 = vadd.f32 %v1200_v34, %v601_v40  ;;  %641 = vst.msk [vmem:[%s1677_s27 + $0x8] sm:$0xff] %vm446_vm0, %v567_v37 }
  0xea   : > { %649 = vst.msk [vmem:[%s1677_s27 + $0x48] sm:$0xff] %vm446_vm0, %v607_v38  ;;  %640 = vst.msk [vmem:[%s1677_s27] sm:$0xff] %vm446_vm0, %v562_v41  ;;  %v1330_v43 = vpop.f32.mrb[2].mxu0 }
  0xeb   : > { %648 = vst.msk [vmem:[%s1677_s27 + $0x40] sm:$0xff] %vm446_vm0, %v602_v42  ;;  %v1342_v44 = vpop.f32.mrb[2].mxu1  ;;  %v577_v45 = vadd.f32 %v1330_v43, %v1200_v34  ;;  %v571_v47 = vpop.f32.mrb[3].mxu0 }
  0xec   : > { %v617_v46 = vadd.f32 %v1342_v44, %v1200_v34  ;;  %v611_v48 = vpop.f32.mrb[3].mxu1  ;;  %v572_v49 = vadd.f32 %v1200_v34, %v571_v47 }
  0xed   : > { %v612_v50 = vadd.f32 %v1200_v34, %v611_v48  ;;  %643 = vst.msk [vmem:[%s1677_s27 + $0x18] sm:$0xff] %vm446_vm0, %v577_v45 }
  0xee   : > { %651 = vst.msk [vmem:[%s1677_s27 + $0x58] sm:$0xff] %vm446_vm0, %v617_v46  ;;  %642 = vst.msk [vmem:[%s1677_s27 + $0x10] sm:$0xff] %vm446_vm0, %v572_v49  ;;  %v1333_v51 = vpop.f32.mrb[4].mxu0 }
  0xef   : > { %650 = vst.msk [vmem:[%s1677_s27 + $0x50] sm:$0xff] %vm446_vm0, %v612_v50  ;;  %v1345_v52 = vpop.f32.mrb[4].mxu1  ;;  %v587_v53 = vadd.f32 %v1333_v51, %v1200_v34  ;;  %v581_v55 = vpop.f32.mrb[5].mxu0 }
  0xf0   : > { %v627_v54 = vadd.f32 %v1345_v52, %v1200_v34  ;;  %v621_v56 = vpop.f32.mrb[5].mxu1  ;;  %v582_v57 = vadd.f32 %v1200_v34, %v581_v55 }
  0xf1   : > { %v622_v58 = vadd.f32 %v1200_v34, %v621_v56  ;;  %645 = vst.msk [vmem:[%s1677_s27 + $0x28] sm:$0xff] %vm446_vm0, %v587_v53 }
  0xf2   : > { %653 = vst.msk [vmem:[%s1677_s27 + $0x68] sm:$0xff] %vm446_vm0, %v627_v54  ;;  %644 = vst.msk [vmem:[%s1677_s27 + $0x20] sm:$0xff] %vm446_vm0, %v582_v57  ;;  %v1336_v59 = vpop.f32.mrb[6].mxu0 }
  0xf3   : > { %652 = vst.msk [vmem:[%s1677_s27 + $0x60] sm:$0xff] %vm446_vm0, %v622_v58  ;;  %v1348_v60 = vpop.f32.mrb[6].mxu1  ;;  %v597_v61 = vadd.f32 %v1336_v59, %v1200_v34  ;;  %v591_v63 = vpop.f32.mrb[7].mxu0 }
  0xf4   : > { %v637_v62 = vadd.f32 %v1348_v60, %v1200_v34  ;;  %v631_v0 = vpop.f32.mrb[7].mxu1  ;;  %v592_v1 = vadd.f32 %v1200_v34, %v591_v63 }
  0xf5   : > { %v632_v2 = vadd.f32 %v1200_v34, %v631_v0  ;;  %647 = vst.msk [vmem:[%s1677_s27 + $0x38] sm:$0xff] %vm446_vm0, %v597_v61 }
  0xf6   : > { %655 = vst.msk [vmem:[%s1677_s27 + $0x78] sm:$0xff] %vm446_vm0, %v637_v62  ;;  %646 = vst.msk [vmem:[%s1677_s27 + $0x30] sm:$0xff] %vm446_vm0, %v592_v1  ;;  %v1391_v6 = vpop.f32.mrb[8].mxu0 }
  0xf7   : > { %654 = vst.msk [vmem:[%s1677_s27 + $0x70] sm:$0xff] %vm446_vm0, %v632_v2  ;;  %v1359_v5 = vpop.f32.mrb[8].mxu1  ;;  %v911_v8 = vadd.f32 %v1391_v6, %v1711_v4  ;;  %v905_v10 = vpop.f32.mrb[9].mxu0 }
  0xf8   : > { %v739_v7 = vadd.f32 %v1359_v5, %v1706_v3  ;;  %v733_v9 = vpop.f32.mrb[9].mxu1  ;;  %v906_v12 = vadd.f32 %v1711_v4, %v905_v10 }
  0xf9   : > { %v734_v11 = vadd.f32 %v1706_v3, %v733_v9  ;;  %985 = vst.msk [vmem:[%s1731_s20 + $0x8] sm:$0xff] %vm446_vm0, %v911_v8 }
  0xfa   : > { %813 = vst.msk [vmem:[%s1725_s17 + $0x8] sm:$0xff] %vm446_vm0, %v739_v7  ;;  %984 = vst.msk [vmem:[%s1731_s20] sm:$0xff] %vm446_vm0, %v906_v12  ;;  %v1394_v14 = vpop.f32.mrb[10].mxu0 }
  0xfb   : > { %812 = vst.msk [vmem:[%s1725_s17] sm:$0xff] %vm446_vm0, %v734_v11  ;;  %v1362_v13 = vpop.f32.mrb[10].mxu1  ;;  %v921_v16 = vadd.f32 %v1394_v14, %v1711_v4  ;;  %v915_v18 = vpop.f32.mrb[11].mxu0 }
  0xfc   : > { %v749_v15 = vadd.f32 %v1362_v13, %v1706_v3  ;;  %v743_v17 = vpop.f32.mrb[11].mxu1  ;;  %v916_v20 = vadd.f32 %v1711_v4, %v915_v18 }
  0xfd   : > { %v744_v19 = vadd.f32 %v1706_v3, %v743_v17  ;;  %987 = vst.msk [vmem:[%s1731_s20 + $0x18] sm:$0xff] %vm446_vm0, %v921_v16 }
  0xfe   : > { %815 = vst.msk [vmem:[%s1725_s17 + $0x18] sm:$0xff] %vm446_vm0, %v749_v15  ;;  %986 = vst.msk [vmem:[%s1731_s20 + $0x10] sm:$0xff] %vm446_vm0, %v916_v20  ;;  %v1397_v22 = vpop.f32.mrb[12].mxu0 }
  0xff   : > { %814 = vst.msk [vmem:[%s1725_s17 + $0x10] sm:$0xff] %vm446_vm0, %v744_v19  ;;  %v1365_v21 = vpop.f32.mrb[12].mxu1  ;;  %v931_v24 = vadd.f32 %v1397_v22, %v1711_v4  ;;  %v925_v26 = vpop.f32.mrb[13].mxu0 }
 0x100   : > { %v759_v23 = vadd.f32 %v1365_v21, %v1706_v3  ;;  %v753_v25 = vpop.f32.mrb[13].mxu1  ;;  %v926_v28 = vadd.f32 %v1711_v4, %v925_v26 }
 0x101   : > { %v754_v27 = vadd.f32 %v1706_v3, %v753_v25  ;;  %989 = vst.msk [vmem:[%s1731_s20 + $0x28] sm:$0xff] %vm446_vm0, %v931_v24 }
 0x102   : > { %817 = vst.msk [vmem:[%s1725_s17 + $0x28] sm:$0xff] %vm446_vm0, %v759_v23  ;;  %988 = vst.msk [vmem:[%s1731_s20 + $0x20] sm:$0xff] %vm446_vm0, %v926_v28  ;;  %v1400_v30 = vpop.f32.mrb[14].mxu0 }
 0x103   : > { %816 = vst.msk [vmem:[%s1725_s17 + $0x20] sm:$0xff] %vm446_vm0, %v754_v27  ;;  %v1368_v29 = vpop.f32.mrb[14].mxu1  ;;  %v941_v32 = vadd.f32 %v1400_v30, %v1711_v4  ;;  %v935_v34 = vpop.f32.mrb[15].mxu0 }
 0x104   : > { %v769_v31 = vadd.f32 %v1368_v29, %v1706_v3  ;;  %v763_v33 = vpop.f32.mrb[15].mxu1  ;;  %v936_v36 = vadd.f32 %v1711_v4, %v935_v34 }
 0x105   : > { %v764_v35 = vadd.f32 %v1706_v3, %v763_v33  ;;  %991 = vst.msk [vmem:[%s1731_s20 + $0x38] sm:$0xff] %vm446_vm0, %v941_v32 }
 0x106   : > { %819 = vst.msk [vmem:[%s1725_s17 + $0x38] sm:$0xff] %vm446_vm0, %v769_v31  ;;  %990 = vst.msk [vmem:[%s1731_s20 + $0x30] sm:$0xff] %vm446_vm0, %v936_v36  ;;  %v1403_v38 = vpop.f32.mrb[16].mxu0 }
 0x107   : > { %818 = vst.msk [vmem:[%s1725_s17 + $0x30] sm:$0xff] %vm446_vm0, %v764_v35  ;;  %v1371_v37 = vpop.f32.mrb[16].mxu1  ;;  %v951_v40 = vadd.f32 %v1403_v38, %v1711_v4  ;;  %v945_v42 = vpop.f32.mrb[17].mxu0 }
 0x108   : > { %v779_v39 = vadd.f32 %v1371_v37, %v1706_v3  ;;  %v773_v41 = vpop.f32.mrb[17].mxu1  ;;  %v946_v44 = vadd.f32 %v1711_v4, %v945_v42 }
 0x109   : > { %v774_v43 = vadd.f32 %v1706_v3, %v773_v41  ;;  %993 = vst.msk [vmem:[%s1731_s20 + $0x48] sm:$0xff] %vm446_vm0, %v951_v40 }
 0x10a   : > { %821 = vst.msk [vmem:[%s1725_s17 + $0x48] sm:$0xff] %vm446_vm0, %v779_v39  ;;  %992 = vst.msk [vmem:[%s1731_s20 + $0x40] sm:$0xff] %vm446_vm0, %v946_v44  ;;  %v1406_v46 = vpop.f32.mrb[18].mxu0 }
 0x10b   : > { %820 = vst.msk [vmem:[%s1725_s17 + $0x40] sm:$0xff] %vm446_vm0, %v774_v43  ;;  %v1374_v45 = vpop.f32.mrb[18].mxu1  ;;  %v961_v48 = vadd.f32 %v1406_v46, %v1711_v4  ;;  %v955_v50 = vpop.f32.mrb[19].mxu0 }
 0x10c   : > { %v789_v47 = vadd.f32 %v1374_v45, %v1706_v3  ;;  %v783_v49 = vpop.f32.mrb[19].mxu1  ;;  %v956_v52 = vadd.f32 %v1711_v4, %v955_v50 }
 0x10d   : > { %v784_v51 = vadd.f32 %v1706_v3, %v783_v49  ;;  %995 = vst.msk [vmem:[%s1731_s20 + $0x58] sm:$0xff] %vm446_vm0, %v961_v48 }
 0x10e   : > { %823 = vst.msk [vmem:[%s1725_s17 + $0x58] sm:$0xff] %vm446_vm0, %v789_v47  ;;  %994 = vst.msk [vmem:[%s1731_s20 + $0x50] sm:$0xff] %vm446_vm0, %v956_v52  ;;  %v1409_v54 = vpop.f32.mrb[20].mxu0 }
 0x10f   : > { %822 = vst.msk [vmem:[%s1725_s17 + $0x50] sm:$0xff] %vm446_vm0, %v784_v51  ;;  %v1377_v53 = vpop.f32.mrb[20].mxu1  ;;  %v971_v56 = vadd.f32 %v1409_v54, %v1711_v4  ;;  %v965_v58 = vpop.f32.mrb[21].mxu0 }
 0x110   : > { %v799_v55 = vadd.f32 %v1377_v53, %v1706_v3  ;;  %v793_v57 = vpop.f32.mrb[21].mxu1  ;;  %v966_v60 = vadd.f32 %v1711_v4, %v965_v58 }
 0x111   : > { %v794_v59 = vadd.f32 %v1706_v3, %v793_v57  ;;  %997 = vst.msk [vmem:[%s1731_s20 + $0x68] sm:$0xff] %vm446_vm0, %v971_v56 }
 0x112   : > { %825 = vst.msk [vmem:[%s1725_s17 + $0x68] sm:$0xff] %vm446_vm0, %v799_v55  ;;  %996 = vst.msk [vmem:[%s1731_s20 + $0x60] sm:$0xff] %vm446_vm0, %v966_v60  ;;  %v1412_v62 = vpop.f32.mrb[22].mxu0 }
 0x113   : > { %824 = vst.msk [vmem:[%s1725_s17 + $0x60] sm:$0xff] %vm446_vm0, %v794_v59  ;;  %v1380_v61 = vpop.f32.mrb[22].mxu1  ;;  %v981_v0 = vadd.f32 %v1412_v62, %v1711_v4  ;;  %v975_v2 = vpop.f32.mrb[23].mxu0 }
 0x114   : > { %v809_v63 = vadd.f32 %v1380_v61, %v1706_v3  ;;  %v803_v1 = vpop.f32.mrb[23].mxu1  ;;  %v976_v6 = vadd.f32 %v1711_v4, %v975_v2 }
 0x115   : > { %v804_v5 = vadd.f32 %v1706_v3, %v803_v1  ;;  %999 = vst.msk [vmem:[%s1731_s20 + $0x78] sm:$0xff] %vm446_vm0, %v981_v0 }
 0x116   : > { %827 = vst.msk [vmem:[%s1725_s17 + $0x78] sm:$0xff] %vm446_vm0, %v809_v63  ;;  %998 = vst.msk [vmem:[%s1731_s20 + $0x70] sm:$0xff] %vm446_vm0, %v976_v6 }
 0x117   : > { %826 = vst.msk [vmem:[%s1725_s17 + $0x70] sm:$0xff] %vm446_vm0, %v804_v5 }
 0x118 PF: > { %s20_s11 = sadd.s32 1, %s1487_s11   ;;  %s1848_s30 = smov %s1483_s10 }
 0x119   : > { %p17_p5 = scmp.ge.s32.totalorder %s20_s11, 4   ;;  %s1849_s10 = smov %s1851_s12 }
 0x11b   :  { %19 = sbr.rel (!%p17_p5) target bundleno = 2 (0x2), region = 102 }

</bundles_post_ra>
